<compile_context>
chip_gen: v6e
topology: v6e:2x2x1
jax: 0.10.0
libtpu: 0.0.40
codegen_flags: <defaults>
</compile_context>

<pallas_src>
import functools

import jax
import jax.numpy as jnp
from jax.experimental import pallas as pl
from jax.experimental.pallas import tpu as pltpu

_MIB = 1024 * 1024


def _vmem_budget_bytes():
    """Scoped-VMEM budget for this kernel, derived from the chip if possible."""
    try:
        cap = int(getattr(pltpu.get_tpu_info(), "vmem_capacity_bytes", 64 * _MIB))
    except Exception:
        # Unknown backend: assume the smallest physical VMEM (v7x, 64 MiB/TC).
        cap = 64 * _MIB
    # Leave half of physical VMEM for the compiler / other fusions:
    # 32 MiB on v7x (64 MiB physical), 64 MiB on v5e/v6e (128 MiB physical).
    return min(cap // 2, 64 * _MIB)


def _round_up(v, m):
    return ((v + m - 1) // m) * m


def _pick_row_tile(n, d, itemsize, target_bytes):
    sub = 8 if itemsize >= 4 else 16          # sublane multiple (packed dtypes: 16)
    # Biggest row tile whose bytes stay near the target (mem-bound streaming knee).
    tn = max(sub, target_bytes // max(1, d * itemsize))
    # Megacore load balance (v7x has 2 TensorCores): keep the grid >= ~8 steps
    # so neither core idles for half the kernel when N is moderate.
    tn_cap = max(sub, _round_up(pl.cdiv(n, 8), sub))
    tn = min(tn, tn_cap)
    tn = max(sub, (tn // sub) * sub)
    # Never exceed the (sublane-rounded) number of rows.
    return min(tn, _round_up(n, sub))


# ----------------------------- row-tiled path ------------------------------


def _pseudo_alr_kernel(x_ref, o_ref):
    d = x_ref.shape[-1]
    x = x_ref[...]
    # f32 compute: v5e EUP/VPU have no bf16 path; also better precision.
    # TODO(synk): on v7x, if a bundle dump shows the EUP slot binding for f32
    # I/O, a bf16 log1p (bf16 EUP) would roughly double transcendental rate.
    y = jnp.log1p(x.astype(jnp.float32))
    z = y - y[:, 0:1]                         # column 0 is identically 0
    # Rotate one lane "left" (jnp.roll semantics: shift d-1 == shift -1) so
    # columns 1..D-1 land in lanes 0..D-2, then store the lane-dense (TN, D-1)
    # tile.  Padded rows of a partial last block may hold NaN/Inf from log1p
    # of undefined VMEM; they are dropped on store (no trap).
    z = pltpu.roll(z, shift=d - 1, axis=1)
    o_ref[...] = z[:, : d - 1].astype(o_ref.dtype)


def _pseudo_alr_pallas_rows(x, vmem_budget):
    n, d = x.shape
    itemsize = jnp.dtype(x.dtype).itemsize
    tn = _pick_row_tile(n, d, itemsize, target_bytes=vmem_budget // 8)
    steps = pl.cdiv(n, tn)
    tile_bytes = tn * d * itemsize

    # Triple-buffer the input when tiles are small enough that per-step DMA
    # issue latency could otherwise peek out from under compute.
    if steps >= 4 and tile_bytes < _MIB:
        in_spec = pl.BlockSpec((tn, d), lambda i: (i, 0),
                               pipeline_mode=pl.Buffered(3))
    else:
        in_spec = pl.BlockSpec((tn, d), lambda i: (i, 0))

    cost = pl.CostEstimate(
        flops=2 * n * d,
        transcendentals=n * d,
        bytes_accessed=(n * d + n * (d - 1)) * itemsize,
    )
    return pl.pallas_call(
        _pseudo_alr_kernel,
        out_shape=jax.ShapeDtypeStruct((n, d - 1), x.dtype),
        grid_spec=pltpu.PrefetchScalarGridSpec(
            num_scalar_prefetch=0,
            grid=(steps,),
            in_specs=[in_spec],
            out_specs=pl.BlockSpec((tn, d - 1), lambda i: (i, 0)),
        ),
        compiler_params=pltpu.CompilerParams(
            dimension_semantics=("parallel",),
            vmem_limit_bytes=vmem_budget,
        ),
        cost_estimate=cost,
    )(x)


# ---------------------- column-tiled path (very wide D) ---------------------


def _pseudo_alr_col_kernel(x_ref, ref_ref, o_ref):
    x = x_ref[...].astype(jnp.float32)
    y0 = jnp.log1p(ref_ref[:, 0:1].astype(jnp.float32))
    o_ref[...] = (jnp.log1p(x) - y0).astype(o_ref.dtype)


def _pseudo_alr_pallas_cols(x, vmem_budget):
    n, d = x.shape
    itemsize = jnp.dtype(x.dtype).itemsize
    sub = 8 if itemsize >= 4 else 16
    tc = min(512, _round_up(d, 128))
    target = vmem_budget // 8
    tn = max(sub, (target // max(1, tc * itemsize) // sub) * sub)
    tn = min(tn, _round_up(n, sub))

    full = pl.pallas_call(
        _pseudo_alr_col_kernel,
        out_shape=jax.ShapeDtypeStruct((n, d), x.dtype),
        grid_spec=pltpu.PrefetchScalarGridSpec(
            num_scalar_prefetch=0,
            grid=(pl.cdiv(n, tn), pl.cdiv(d, tc)),
            in_specs=[
                pl.BlockSpec((tn, tc), lambda i, j: (i, j)),
                # Second view of x always mapping the column-0 block: every
                # column tile can subtract the ALR reference column.
                pl.BlockSpec((tn, 128), lambda i, j: (i, 0)),
            ],
            out_specs=pl.BlockSpec((tn, tc), lambda i, j: (i, j)),
        ),
        compiler_params=pltpu.CompilerParams(
            dimension_semantics=("parallel", "parallel"),
            vmem_limit_bytes=vmem_budget,
        ),
    )(x, x)
    # TODO(synk): this rare wide-D path still slices column 0 in the wrapper;
    # emitting (N, D-1) directly would need element-offset column blocks.
    return full[:, 1:]


# -------------------------------- dispatcher --------------------------------


@functools.partial(jax.jit, static_argnames=("force_pallas", "force_col"))
def pseudo_alr(x, force_pallas=False, force_col=False):
    """pseudoALR transform: (N, D) -> (N, D-1)."""
    n, d = x.shape
    itemsize = jnp.dtype(x.dtype).itemsize
    vmem_budget = _vmem_budget_bytes()
    if force_col:
        return _pseudo_alr_pallas_cols(x, vmem_budget)
    # Tiny inputs: pallas_call launch + pipeline spin-up dwarfs a <1 MiB HBM
    # round trip, and D < 16 wastes vreg lanes; let XLA fuse log1p + slice.
    if not force_pallas and (n * d * itemsize < _MIB or d < 16):
        y = jnp.log1p(x)
        return y[:, 1:] - y[:, 0:1]
    # Row-tiled path needs 2 in + 2 out full-width tiles at >= 8 sublanes;
    # if even that does not fit the budget, switch to column tiling.
    sub = 8 if itemsize >= 4 else 16
    if 4 * sub * d * itemsize > vmem_budget:
        return _pseudo_alr_pallas_cols(x, vmem_budget)
    return _pseudo_alr_pallas_rows(x, vmem_budget)


def _reference(x):
    y = jnp.log1p(x)
    return y[:, 1:] - y[:, 0:1]


if __name__ == "__main__":
    key = jax.random.PRNGKey(0)
    k1, k2, k3 = jax.random.split(key, 3)

    # Small shape (batch=8, features=128); force the Pallas row path so the
    # kernel (roll + direct (N, D-1) store) is exercised.
    x_small = jax.random.uniform(k1, (8, 128), dtype=jnp.float32,
                                 minval=0.0, maxval=5.0)
    out_small = jax.block_until_ready(pseudo_alr(x_small, force_pallas=True))
    assert out_small.shape == (8, 127)
    assert jnp.allclose(out_small, _reference(x_small), atol=1e-6, rtol=1e-6)

    # Larger shape exercising row tiling (8 grid steps for megacore balance),
    # the partial last block (1050 % 136 != 0), and Buffered(3) inputs.
    x_big = jax.random.uniform(k2, (1050, 384), dtype=jnp.float32,
                               minval=0.0, maxval=5.0)
    out_big = jax.block_until_ready(pseudo_alr(x_big))
    assert out_big.shape == (1050, 383)
    assert jnp.allclose(out_big, _reference(x_big), atol=1e-5, rtol=1e-5)

    # Column-tiled robustness path (2-D grid + reference-column block),
    # including a partial last column block.
    x_wide = jax.random.uniform(k3, (64, 640), dtype=jnp.float32,
                                minval=0.0, maxval=5.0)
    out_wide = jax.block_until_ready(pseudo_alr(x_wide, force_col=True))
    assert out_wide.shape == (64, 639)
    assert jnp.allclose(out_wide, _reference(x_wide), atol=1e-5, rtol=1e-5)

    # Dispatcher's XLA fallback for tiny inputs also matches.
    out_fallback = jax.block_until_ready(pseudo_alr(x_small))
    assert jnp.allclose(out_fallback, _reference(x_small), atol=1e-6, rtol=1e-6)

    print("KERNEL_OK")
</pallas_src>

<mosaic_0001>
module attributes {stable_mosaic.version = 11 : i64} {
  func.func @_pseudo_alr_kernel(%arg0: i32, %arg1: memref<8x128xf32, #tpu.memory_space<vmem>>, %arg2: memref<8x127xf32, #tpu.memory_space<vmem>>) attributes {dimension_semantics = [#tpu.dimension_semantics<parallel>], iteration_bounds = array<i64: 1>, scalar_prefetch = 0 : i64, scratch_operands = 0 : i64, tpu.core_type = #tpu.core_type<tc>, window_params = [{transform_indices = @transform_0, window_bounds = array<i64: 8, 128>}, {transform_indices = @transform_1, window_bounds = array<i64: 8, 127>}]} {
    %c0 = arith.constant 0 : index
    %c0_0 = arith.constant 0 : index
    %0 = vector.load %arg1[%c0, %c0_0] : memref<8x128xf32, #tpu.memory_space<vmem>>, vector<8x128xf32>
    %1 = math.log1p %0 : vector<8x128xf32>
    %2 = vector.extract_strided_slice %1 {offsets = [0, 0], sizes = [8, 1], strides = [1, 1]} : vector<8x128xf32> to vector<8x1xf32>
    %3 = vector.broadcast %2 : vector<8x1xf32> to vector<8x128xf32>
    %4 = arith.subf %1, %3 : vector<8x128xf32>
    %c127_i32 = arith.constant 127 : i32
    %5 = tpu.dynamic_rotate %4 by %c127_i32 dim 1 : vector<8x128xf32>, i32 -> vector<8x128xf32>
    %6 = vector.extract_strided_slice %5 {offsets = [0, 0], sizes = [8, 127], strides = [1, 1]} : vector<8x128xf32> to vector<8x127xf32>
    %c0_1 = arith.constant 0 : index
    %c0_2 = arith.constant 0 : index
    %7 = vector.load %arg2[%c0_1, %c0_2] : memref<8x127xf32, #tpu.memory_space<vmem>>, vector<8x127xf32>
    tpu.vector_store %arg2[%c0_1, %c0_2], %6 {strides = array<i32>} : memref<8x127xf32, #tpu.memory_space<vmem>>, vector<8x127xf32>,
    return
  }
  func.func @transform_0(%arg0: i32) -> (i32, i32) {
    %c0_i32 = arith.constant 0 : i32
    %c0_i32_0 = arith.constant 0 : i32
    return %arg0, %c0_i32 : i32, i32
  }
  func.func @transform_1(%arg0: i32) -> (i32, i32) {
    %c0_i32 = arith.constant 0 : i32
    %c0_i32_0 = arith.constant 0 : i32
    return %arg0, %c0_i32 : i32, i32
  }
}

</mosaic_0001>

<bundles_post_ra>
// kernel: pseudo_alr.1
= control target key start
LH: loop header
LB: loop body
LE: loop exit
PB: predicated region body
PF: predicated region fallthrough
CT: control target
= control target key end

     0   :  { %6 = vsyncpa [#allocation3], 0  ;;  %s127_s0 = inlined_call_operand.hbm [shape: f32[8,128], index: 0, kind: input, shape index: {}]   ;;  %s128_s1 = inlined_call_operand.hbm [shape: f32[8,127], index: 1, kind: output, shape index: {}]  }
   0x1   :  { %7 = vsyncpa [#allocation4], 0  ;;  %s107_s6 = smov [#allocation2]  }
   0x2   :  { %s14_s7 = sshll.u32 %s107_s6, 4  ;;  %s15_s7 = int_to_ptr.vmem [resolvable:$true] %s14_s7 }
   0x3   :  { %s71_s8 = scalar_lea.vmem %s15_s7, 128  ;;  %p76_p1 = scmp.lt.s32.totalorder %s15_s7, %s15_s7 }
   0x4   :  { %p72_p0 = scmp.ne.s32.totalorder %s15_s7, %s71_s8  ;;  %p77_p2 = scmp.lt.s32.totalorder %s71_s8, %s71_s8 }
   0x6   :  { %p78_p3 = por %p77_p2, %p76_p1 }
   0x8   :  { %p79_p4 = pnand %p78_p3, %p72_p0 }
   0xa   :  { %82 = shalt.err (!%p79_p4)
}
   0xb   :  { %17 = dma.hbm_to_vmem [thread:$0]  %s127_s0, 128, %s15_s7, [#allocation3]  }
   0xc   :  { %103 = dma.done.wait [#allocation3], 128  }
   0xd   :  { %104 = vsyncadd [#allocation3], 4294967168  ;;  %v108_v0 = vmov 0   ;;  %v21_v1 = vld [vmem:[#allocation2] sm:$0xff]  ;;  %s109_s11 = smov 127   ;;  %s110_s0 = smov [#allocation5]  }
   0xe   :  { %60 = vset.pattern.permute.xlu0 %v108_v0  ;;  %v22_v2 = vadd.f32 1.0, %v21_v1  ;;  %v25_v3 = vmul.f32 -0.5, %v21_v1  ;;  %v28_v5 = vand.u32 2147483647, %v21_v1  ;;  %s47_s12 = sshll.u32 %s110_s0, 4  ;;  %vm39_vm1 = vcmask 1039360   ;;  %s48_s12 = int_to_ptr.vmem [resolvable:$true] %s47_s12 }
   0xf   :  { %s83_s13 = scalar_lea.vmem %s48_s12, 128  ;;  %p88_p6 = scmp.lt.s32.totalorder %s48_s12, %s48_s12 }
  0x10   :  { %61 = vlog2.f32 %v22_v2  ;;  %v26_v4 = vadd.f32 1.0, %v25_v3  ;;  %vm29_vm0 = vcmp.lt.f32.partialorder %v28_v5, 0.0004427343  ;;  %p84_p5 = scmp.ne.s32.totalorder %s48_s12, %s83_s13  ;;  %p89_p7 = scmp.lt.s32.totalorder %s83_s13, %s83_s13 }
  0x12   :  { %v27_v6 = vmul.f32 %v26_v4, %v21_v1  ;;  %p90_p8 = por %p89_p7, %p88_p6 }
  0x14   :  { %p91_p9 = pnand %p90_p8, %p84_p5 }
  0x1d   :  { %v62_v7 = vpop.eup %61 }
  0x1e   :  { %v24_v8 = vmul.f32 0.6931472, %v62_v7 }
  0x20   :  { %v30_v9 = vsel %vm29_vm0, %v27_v6, %v24_v8 }
  0x21   :  { %33 = vperm.xlu0 %60, %v30_v9  }
  0x9c   :  { %v34_v10 = vpop.permute.xlu0 %33 }
  0x9d   :  { %v36_v11 = vsub.f32 %v30_v9, %v34_v10 }
  0x9f   :  { %37 = vrot.lane.b32.xlu0 %v36_v11, %s109_s11 }
 0x111   :  { %v38_v12 = vpop.permute.xlu0 %37 }
 0x112   :  { %40 = vst.msk [vmem:[#allocation5] sm:$0xff] %vm39_vm1, %v38_v12 }
 0x113   :  { %94 = shalt.err (!%p91_p9)
}
 0x114   :  { %50 = dma.vmem_to_hbm [thread:$0]  %s48_s12, 128, %s128_s1, [#allocation4]  }
 0x115   :  { %105 = dma.done.wait [#allocation4], 128  }
 0x116   :  { %106 = vsyncadd [#allocation4], 4294967168 }
 0x117   :  { %54 = vsyncpa [#allocation3], 1 }
 0x118   :  { %55 = vsyncpa [#allocation4], 1 }

</bundles_post_ra>
